<compile_context>
chip_gen: v7x
topology: tpu7x:2x2x1
jax: 0.10.0
libtpu: 0.0.40
codegen_flags: <defaults>
</compile_context>

<pallas_src>
import functools

import jax
import jax.numpy as jnp
from jax import lax
from jax.experimental import pallas as pl
from jax.experimental.pallas import tpu as pltpu


# --------------------------------------------------------------------------
# Fused single-pass kernel: pool + MLP + hardsigmoid + scale on one resident
# (bn, C, HW) slab.  All math is VPU / XLU; no HBM intermediates.
# --------------------------------------------------------------------------
def _se_fused_kernel(x_ref, w1_ref, b1_ref, w2t_ref, b2_ref, o_ref):
    # x_ref:   (bn, C, HW)   input slab
    # w1_ref:  (C, mid)      reduce_conv weight^T, pre-scaled by 1/HW
    # b1_ref:  (1, mid)      reduce_conv bias
    # w2t_ref: (C, mid)      expand_conv weight (C_out, mid)
    # b2_ref:  (C, 1)        expand_conv bias
    # o_ref:   (bn, C, HW)   output slab
    xv = x_ref[...]
    # global average pool (1/HW folded into w1); accumulate in f32
    s = jnp.sum(xv.astype(jnp.float32), axis=-1, keepdims=True)          # (bn, C, 1)
    # reduce 1x1 conv + ReLU (VPU; mid is tiny, MXU not worth it)
    h = jnp.maximum(
        jnp.sum(s * w1_ref[...], axis=1, keepdims=True) + b1_ref[...], 0.0)  # (bn, 1, mid)
    # expand 1x1 conv
    a = jnp.sum(h * w2t_ref[...], axis=-1, keepdims=True) + b2_ref[...]      # (bn, C, 1)
    # hardsigmoid, emitted in x.dtype so the scale stays in the input dtype
    att = jnp.clip(a * (1.0 / 6.0) + 0.5, 0.0, 1.0).astype(o_ref.dtype)
    o_ref[...] = xv * att


# --------------------------------------------------------------------------
# Fallback pass 1: streaming global-average pool + MLP + hardsigmoid.
# Lane-aligned accumulation into a (C, 128) f32 scratch; single XLU reduce and
# the tiny MLP only in the t == last finalize.  Tail mask only built when
# HW % thw != 0, and only the last tile pays for it.
# --------------------------------------------------------------------------
def _pool_mlp_kernel(x_ref, w1_ref, b1_ref, w2t_ref, b2_ref, att_ref, acc_ref,
                     *, hw, thw, has_tail):
    t = pl.program_id(1)
    last = pl.num_programs(1) - 1
    c = acc_ref.shape[0]

    @pl.when(t == 0)
    def _init():
        acc_ref[...] = jnp.zeros_like(acc_ref)

    def _accumulate(mask_tail):
        if thw % 128 == 0:
            # lane-aligned VPU adds, folding the (C, thw) tile to (C, 128)
            partial = jnp.zeros((c, 128), jnp.float32)
            for k in range(thw // 128):
                chunk = x_ref[0, :, k * 128:(k + 1) * 128].astype(jnp.float32)
                if mask_tail:
                    col = t * thw + k * 128 + lax.broadcasted_iota(
                        jnp.int32, (c, 128), 1)
                    chunk = jnp.where(col < hw, chunk, 0.0)
                partial = partial + chunk
            acc_ref[...] += partial
        else:
            # only reached when thw == HW (single full-extent tile)
            xv = x_ref[0].astype(jnp.float32)
            if mask_tail:
                col = t * thw + lax.broadcasted_iota(jnp.int32, xv.shape, 1)
                xv = jnp.where(col < hw, xv, 0.0)
            acc_ref[:, 0:1] += jnp.sum(xv, axis=-1, keepdims=True)

    if has_tail:
        @pl.when(t < last)
        def _body():
            _accumulate(False)

        @pl.when(t == last)
        def _tail():
            _accumulate(True)
    else:
        _accumulate(False)

    @pl.when(t == last)
    def _finalize():
        s = jnp.sum(acc_ref[...], axis=-1, keepdims=True)                # (C, 1)
        h = jnp.maximum(
            jnp.sum(w1_ref[...] * s, axis=0, keepdims=True) + b1_ref[...], 0.0)
        a = jnp.sum(w2t_ref[...] * h, axis=1, keepdims=True) + b2_ref[...]
        att_ref[0] = jnp.clip(a * (1.0 / 6.0) + 0.5, 0.0, 1.0).astype(att_ref.dtype)


# --------------------------------------------------------------------------
# Fallback pass 2: lane-dense broadcast scale.
# --------------------------------------------------------------------------
def _scale_kernel(x_ref, att_ref, o_ref):
    o_ref[...] = x_ref[...] * att_ref[...]


def _vmem_capacity_bytes():
    try:
        info = pltpu.get_tpu_info()
        for attr in ("vmem_capacity_bytes", "vmem_size_bytes", "vmem_bytes"):
            v = getattr(info, attr, None)
            if v:
                return int(v)
    except Exception:
        pass
    return 64 * 1024 * 1024  # conservative (v7x physical VMEM)


def se_layer_forward(x_nchw, w_reduce, b_reduce, w_expand, b_expand,
                     *, force_two_pass=False, thw_override=None,
                     vmem_budget_bytes=None):
    """SELayer forward: x * hardsigmoid(expand(relu(reduce(avgpool(x)))))."""
    N, C, H, W = x_nchw.shape
    mid = w_reduce.shape[0]
    assert w_reduce.shape == (mid, C, 1, 1)
    assert w_expand.shape == (C, mid, 1, 1)
    HW = H * W
    itemsize = x_nchw.dtype.itemsize

    x = x_nchw.reshape(N, C, HW)                 # contiguous reshape, no transpose

    # Tiny-weight folds done once in the wrapper: reduce weight transposed to
    # (C, mid) with 1/HW folded in; expand weight kept as (C_out, mid).
    w1 = jnp.transpose(w_reduce.reshape(mid, C), (1, 0)).astype(jnp.float32) * (1.0 / HW)
    b1 = b_reduce.reshape(1, mid).astype(jnp.float32)
    w2t = w_expand.reshape(C, mid).astype(jnp.float32)
    b2 = b_expand.reshape(C, 1).astype(jnp.float32)
    weight_bytes = 2 * 4 * (w1.size + b1.size + w2t.size + b2.size)

    cap = vmem_budget_bytes if vmem_budget_bytes is not None else _vmem_capacity_bytes()
    usable = int(cap * 0.7)                      # double-buffer budget with headroom

    # --- fused path: one read + one write of x when a batch slab fits VMEM ---
    # Per batch: in + out double-buffered, plus an f32 upcast temp for sub-f32 x.
    per_batch = (4 * itemsize + (4 if itemsize < 4 else 0)) * C * HW
    if (not force_two_pass) and (per_batch + weight_bytes <= usable):
        target_in = 2 * 1024 * 1024              # aim for ~2 MiB input blocks
        bn = max(1, min(N,
                        (usable - weight_bytes) // per_batch,
                        max(1, target_in // max(1, itemsize * C * HW))))
        NB = pl.cdiv(N, bn)
        out = pl.pallas_call(
            _se_fused_kernel,
            out_shape=jax.ShapeDtypeStruct((N, C, HW), x.dtype),
            grid_spec=pltpu.PrefetchScalarGridSpec(
                num_scalar_prefetch=0,
                grid=(NB,),
                in_specs=[
                    pl.BlockSpec((bn, C, HW), lambda n: (n, 0, 0)),
                    pl.BlockSpec((C, mid), lambda n: (0, 0)),
                    pl.BlockSpec((1, mid), lambda n: (0, 0)),
                    pl.BlockSpec((C, mid), lambda n: (0, 0)),
                    pl.BlockSpec((C, 1), lambda n: (0, 0)),
                ],
                out_specs=pl.BlockSpec((bn, C, HW), lambda n: (n, 0, 0)),
            ),
            compiler_params=pltpu.CompilerParams(
                dimension_semantics=("parallel",),
                vmem_limit_bytes=usable),
        )(x, w1, b1, w2t, b2)
        return out.reshape(N, C, H, W)

    # --- two-pass streaming fallback (slab does not fit VMEM) ----------------
    if thw_override is not None:
        thw = int(thw_override)
    else:
        lanes_budget = max(128, usable // max(1, C * itemsize * 4))
        if HW <= lanes_budget:
            thw = HW                              # single full-extent tile
        else:
            thw = min(lanes_budget, 8192)         # cap unroll / chunk count
            thw = max(128, (thw // 128) * 128)    # lane-dense, 128-multiple
    T = pl.cdiv(HW, thw)
    has_tail = (HW % thw) != 0

    # pass 1: global average pool + SE MLP + hardsigmoid
    att = pl.pallas_call(
        functools.partial(_pool_mlp_kernel, hw=HW, thw=thw, has_tail=has_tail),
        out_shape=jax.ShapeDtypeStruct((N, C, 1), x.dtype),
        grid_spec=pltpu.PrefetchScalarGridSpec(
            num_scalar_prefetch=0,
            grid=(N, T),
            in_specs=[
                pl.BlockSpec((1, C, thw), lambda n, t: (n, 0, t)),
                pl.BlockSpec((C, mid), lambda n, t: (0, 0)),
                pl.BlockSpec((1, mid), lambda n, t: (0, 0)),
                pl.BlockSpec((C, mid), lambda n, t: (0, 0)),
                pl.BlockSpec((C, 1), lambda n, t: (0, 0)),
            ],
            out_specs=pl.BlockSpec((1, C, 1), lambda n, t: (n, 0, 0)),
            scratch_shapes=[pltpu.VMEM((C, 128), jnp.float32)],
        ),
        compiler_params=pltpu.CompilerParams(
            dimension_semantics=("parallel", "arbitrary"),
            vmem_limit_bytes=usable),
    )(x, w1, b1, w2t, b2)

    # pass 2: broadcast channel attention over the spatial dims (lane-dense)
    out = pl.pallas_call(
        _scale_kernel,
        out_shape=jax.ShapeDtypeStruct((N, C, HW), x.dtype),
        grid_spec=pltpu.PrefetchScalarGridSpec(
            num_scalar_prefetch=0,
            grid=(N, T),
            in_specs=[
                pl.BlockSpec((1, C, thw), lambda n, t: (n, 0, t)),
                pl.BlockSpec((1, C, 1), lambda n, t: (n, 0, 0)),
            ],
            out_specs=pl.BlockSpec((1, C, thw), lambda n, t: (n, 0, t)),
        ),
        compiler_params=pltpu.CompilerParams(
            dimension_semantics=("parallel", "parallel"),
            vmem_limit_bytes=usable),
    )(x, att)

    return out.reshape(N, C, H, W)


if __name__ == "__main__":
    key = jax.random.PRNGKey(0)

    def ref_forward(x, w_reduce, b_reduce, w_expand, b_expand):
        mid, C = w_reduce.shape[0], w_reduce.shape[1]
        pool = jnp.mean(x, axis=(2, 3))                                       # (N, C)
        h = jnp.maximum(pool @ w_reduce.reshape(mid, C).T + b_reduce, 0.0)    # (N, mid)
        a = h @ w_expand.reshape(C, mid).T + b_expand                         # (N, C)
        att = jnp.clip(a / 6.0 + 0.5, 0.0, 1.0)                               # hardsigmoid
        return x * att[:, :, None, None]

    reduction, min_dim = 4, 16

    # ---- test 1: fused single-pass path (SELayer default sizes) -------------
    k_x, k_wr, k_br, k_we, k_be = jax.random.split(key, 5)
    N, C, H, W = 2, 4, 16, 16
    mid = max(round(C / reduction), min_dim)     # SELayer default: mid = 16
    x = jax.random.normal(k_x, (N, C, H, W), jnp.float32)
    w_reduce = jax.random.normal(k_wr, (mid, C, 1, 1), jnp.float32) * 0.3
    b_reduce = jax.random.normal(k_br, (mid,), jnp.float32) * 0.1
    w_expand = jax.random.normal(k_we, (C, mid, 1, 1), jnp.float32) * 0.3
    b_expand = jax.random.normal(k_be, (C,), jnp.float32) * 0.1

    out = jax.block_until_ready(
        se_layer_forward(x, w_reduce, b_reduce, w_expand, b_expand))
    ref = ref_forward(x, w_reduce, b_reduce, w_expand, b_expand)
    assert out.shape == (N, C, H, W)
    err = jnp.max(jnp.abs(out - ref))
    assert jnp.allclose(out, ref, atol=1e-4, rtol=1e-4), f"fused max err {err}"

    # ---- test 2: two-pass fallback with a non-divisible spatial tail --------
    k2 = jax.random.split(key, 6)
    N2, C2, H2, W2 = 1, 8, 50, 60                # HW = 3000, thw = 1024 -> masked tail
    mid2 = max(round(C2 / reduction), min_dim)
    x2 = jax.random.normal(k2[0], (N2, C2, H2, W2), jnp.float32)
    wr2 = jax.random.normal(k2[1], (mid2, C2, 1, 1), jnp.float32) * 0.3
    br2 = jax.random.normal(k2[2], (mid2,), jnp.float32) * 0.1
    we2 = jax.random.normal(k2[3], (C2, mid2, 1, 1), jnp.float32) * 0.3
    be2 = jax.random.normal(k2[4], (C2,), jnp.float32) * 0.1

    out2 = jax.block_until_ready(
        se_layer_forward(x2, wr2, br2, we2, be2,
                         force_two_pass=True, thw_override=1024))
    ref2 = ref_forward(x2, wr2, br2, we2, be2)
    err2 = jnp.max(jnp.abs(out2 - ref2))
    assert jnp.allclose(out2, ref2, atol=1e-4, rtol=1e-4), f"two-pass max err {err2}"

    print("KERNEL_OK")
</pallas_src>

<mosaic_0001>
module attributes {stable_mosaic.version = 11 : i64} {
  func.func @_se_fused_kernel(%arg0: i32, %arg1: memref<2x4x256xf32, #tpu.memory_space<vmem>>, %arg2: memref<4x16xf32, #tpu.memory_space<vmem>>, %arg3: memref<1x16xf32, #tpu.memory_space<vmem>>, %arg4: memref<4x16xf32, #tpu.memory_space<vmem>>, %arg5: memref<4x1xf32, #tpu.memory_space<vmem>>, %arg6: memref<2x4x256xf32, #tpu.memory_space<vmem>>) attributes {dimension_semantics = [#tpu.dimension_semantics<parallel>], iteration_bounds = array<i64: 1>, scalar_prefetch = 0 : i64, scratch_operands = 0 : i64, tpu.core_type = #tpu.core_type<tc>, window_params = [{transform_indices = @transform_0, window_bounds = array<i64: 2, 4, 256>}, {pipeline_mode = #tpu.pipeline_mode<synchronous>, transform_indices = @transform_1, window_bounds = array<i64: 4, 16>}, {pipeline_mode = #tpu.pipeline_mode<synchronous>, transform_indices = @transform_2, window_bounds = array<i64: 1, 16>}, {pipeline_mode = #tpu.pipeline_mode<synchronous>, transform_indices = @transform_3, window_bounds = array<i64: 4, 16>}, {pipeline_mode = #tpu.pipeline_mode<synchronous>, transform_indices = @transform_4, window_bounds = array<i64: 4, 1>}, {transform_indices = @transform_5, window_bounds = array<i64: 2, 4, 256>}]} {
    %c0 = arith.constant 0 : index
    %c0_0 = arith.constant 0 : index
    %c0_1 = arith.constant 0 : index
    %0 = vector.load %arg1[%c0, %c0_0, %c0_1] : memref<2x4x256xf32, #tpu.memory_space<vmem>>, vector<2x4x256xf32>
    %cst = arith.constant dense<0.000000e+00> : vector<2x4xf32>
    %1 = vector.multi_reduction <add>, %0, %cst [2] : vector<2x4x256xf32> to vector<2x4xf32>
    %2 = vector.shape_cast %1 : vector<2x4xf32> to vector<2x4x1xf32>
    %c0_2 = arith.constant 0 : index
    %c0_3 = arith.constant 0 : index
    %3 = vector.load %arg2[%c0_2, %c0_3] : memref<4x16xf32, #tpu.memory_space<vmem>>, vector<4x16xf32>
    %4 = vector.shape_cast %3 : vector<4x16xf32> to vector<1x4x16xf32>
    %5 = vector.broadcast %2 : vector<2x4x1xf32> to vector<2x4x16xf32>
    %6 = vector.broadcast %4 : vector<1x4x16xf32> to vector<2x4x16xf32>
    %7 = arith.mulf %5, %6 : vector<2x4x16xf32>
    %cst_4 = arith.constant dense<0.000000e+00> : vector<2x16xf32>
    %8 = vector.multi_reduction <add>, %7, %cst_4 [1] : vector<2x4x16xf32> to vector<2x16xf32>
    %9 = vector.shape_cast %8 : vector<2x16xf32> to vector<2x1x16xf32>
    %c0_5 = arith.constant 0 : index
    %c0_6 = arith.constant 0 : index
    %10 = vector.load %arg3[%c0_5, %c0_6] : memref<1x16xf32, #tpu.memory_space<vmem>>, vector<1x16xf32>
    %11 = vector.shape_cast %10 : vector<1x16xf32> to vector<1x1x16xf32>
    %12 = vector.broadcast %11 : vector<1x1x16xf32> to vector<2x1x16xf32>
    %13 = arith.addf %9, %12 : vector<2x1x16xf32>
    %cst_7 = arith.constant 0.000000e+00 : f32
    %14 = vector.broadcast %cst_7 : f32 to vector<2x1x16xf32>
    %15 = arith.maximumf %13, %14 : vector<2x1x16xf32>
    %c0_8 = arith.constant 0 : index
    %c0_9 = arith.constant 0 : index
    %16 = vector.load %arg4[%c0_8, %c0_9] : memref<4x16xf32, #tpu.memory_space<vmem>>, vector<4x16xf32>
    %17 = vector.shape_cast %16 : vector<4x16xf32> to vector<1x4x16xf32>
    %18 = vector.broadcast %15 : vector<2x1x16xf32> to vector<2x4x16xf32>
    %19 = vector.broadcast %17 : vector<1x4x16xf32> to vector<2x4x16xf32>
    %20 = arith.mulf %18, %19 : vector<2x4x16xf32>
    %cst_10 = arith.constant dense<0.000000e+00> : vector<2x4xf32>
    %21 = vector.multi_reduction <add>, %20, %cst_10 [2] : vector<2x4x16xf32> to vector<2x4xf32>
    %22 = vector.shape_cast %21 : vector<2x4xf32> to vector<2x4x1xf32>
    %c0_11 = arith.constant 0 : index
    %c0_12 = arith.constant 0 : index
    %23 = vector.load %arg5[%c0_11, %c0_12] : memref<4x1xf32, #tpu.memory_space<vmem>>, vector<4x1xf32>
    %24 = vector.shape_cast %23 : vector<4x1xf32> to vector<1x4x1xf32>
    %25 = vector.broadcast %24 : vector<1x4x1xf32> to vector<2x4x1xf32>
    %26 = arith.addf %22, %25 : vector<2x4x1xf32>
    %cst_13 = arith.constant 0.166666672 : f32
    %27 = vector.broadcast %cst_13 : f32 to vector<2x4x1xf32>
    %28 = arith.mulf %26, %27 : vector<2x4x1xf32>
    %cst_14 = arith.constant 5.000000e-01 : f32
    %29 = vector.broadcast %cst_14 : f32 to vector<2x4x1xf32>
    %30 = arith.addf %28, %29 : vector<2x4x1xf32>
    %cst_15 = arith.constant 0.000000e+00 : f32
    %cst_16 = arith.constant 1.000000e+00 : f32
    %31 = vector.broadcast %cst_15 : f32 to vector<2x4x1xf32>
    %32 = arith.maximumf %31, %30 : vector<2x4x1xf32>
    %33 = vector.broadcast %cst_16 : f32 to vector<2x4x1xf32>
    %34 = arith.minimumf %33, %32 : vector<2x4x1xf32>
    %35 = vector.broadcast %34 : vector<2x4x1xf32> to vector<2x4x256xf32>
    %36 = arith.mulf %0, %35 : vector<2x4x256xf32>
    %c0_17 = arith.constant 0 : index
    %c0_18 = arith.constant 0 : index
    %c0_19 = arith.constant 0 : index
    %37 = vector.load %arg6[%c0_17, %c0_18, %c0_19] : memref<2x4x256xf32, #tpu.memory_space<vmem>>, vector<2x4x256xf32>
    tpu.vector_store %arg6[%c0_17, %c0_18, %c0_19], %36 {strides = array<i32>} : memref<2x4x256xf32, #tpu.memory_space<vmem>>, vector<2x4x256xf32>,
    return
  }
  func.func @transform_0(%arg0: i32) -> (i32, i32, i32) {
    %c0_i32 = arith.constant 0 : i32
    %c0_i32_0 = arith.constant 0 : i32
    %c0_i32_1 = arith.constant 0 : i32
    return %arg0, %c0_i32, %c0_i32_0 : i32, i32, i32
  }
  func.func @transform_1(%arg0: i32) -> (i32, i32) {
    %c0_i32 = arith.constant 0 : i32
    %c0_i32_0 = arith.constant 0 : i32
    %c0_i32_1 = arith.constant 0 : i32
    return %c0_i32, %c0_i32_0 : i32, i32
  }
  func.func @transform_2(%arg0: i32) -> (i32, i32) {
    %c0_i32 = arith.constant 0 : i32
    %c0_i32_0 = arith.constant 0 : i32
    %c0_i32_1 = arith.constant 0 : i32
    return %c0_i32, %c0_i32_0 : i32, i32
  }
  func.func @transform_3(%arg0: i32) -> (i32, i32) {
    %c0_i32 = arith.constant 0 : i32
    %c0_i32_0 = arith.constant 0 : i32
    %c0_i32_1 = arith.constant 0 : i32
    return %c0_i32, %c0_i32_0 : i32, i32
  }
  func.func @transform_4(%arg0: i32) -> (i32, i32) {
    %c0_i32 = arith.constant 0 : i32
    %c0_i32_0 = arith.constant 0 : i32
    %c0_i32_1 = arith.constant 0 : i32
    return %c0_i32, %c0_i32_0 : i32, i32
  }
  func.func @transform_5(%arg0: i32) -> (i32, i32, i32) {
    %c0_i32 = arith.constant 0 : i32
    %c0_i32_0 = arith.constant 0 : i32
    %c0_i32_1 = arith.constant 0 : i32
    return %arg0, %c0_i32, %c0_i32_0 : i32, i32, i32
  }
}

</mosaic_0001>

<bundles_post_ra>
// kernel: tpu_custom_call.1
= control target key start
LH: loop header
LB: loop body
LE: loop exit
PB: predicated region body
PF: predicated region fallthrough
CT: control target
= control target key end

     0   :  { %10 = vsyncpa [#allocation3], 0  ;;  %s302_s0 = inlined_call_operand.hbm [shape: f32[2,4,256], index: 0, kind: input, shape index: {}]   ;;  %s303_s1 = inlined_call_operand.vmem [shape: f32[4,16], index: 1, kind: input, shape index: {}]   ;;  %s304_s2 = inlined_call_operand.vmem [shape: f32[1,16], index: 2, kind: input, shape index: {}]   ;;  %s305_s3 = inlined_call_operand.vmem [shape: f32[4,16], index: 3, kind: input, shape index: {}]   ;;  %s306_s4 = inlined_call_operand.vmem [shape: f32[4,1], index: 4, kind: input, shape index: {}]   ;;  %s307_s5 = inlined_call_operand.hbm [shape: f32[2,4,256], index: 5, kind: output, shape index: {}]  }
   0x1   :  { %11 = vsyncpa [#allocation4], 0  ;;  %s208_s18 = smov [#allocation2]   ;;  %s160_s22 = scalar_lea.hbm %s302_s0, 256 }
   0x2   :  { %s17_s19 = sshll.u32 %s208_s18, 4  ;;  %p161_p0 = scmp.ne.s32.totalorder %s302_s0, %s160_s22  ;;  %s18_s19 = int_to_ptr.vmem [resolvable:$true] %s17_s19 }
   0x3   :  { %p164_p1 = scmp.lt.u32.totalorder %s160_s22, %s302_s0 }
   0x5   :  { %p166_p2 = pnand %p164_p1, %p161_p0 }
   0x7   :  { %169 = shalt.err (!%p166_p2)
}
   0x8   :  { %s170_s27 = scalar_lea.vmem %s18_s19, 256  ;;  %p175_p4 = scmp.lt.s32.totalorder %s18_s19, %s18_s19 }
   0x9   :  { %p171_p3 = scmp.ne.s32.totalorder %s18_s19, %s170_s27  ;;  %p176_p5 = scmp.lt.s32.totalorder %s170_s27, %s170_s27 }
   0xb   :  { %p177_p6 = por %p176_p5, %p175_p4 }
   0xd   :  { %p178_p7 = pnand %p177_p6, %p171_p3 }
   0xf   :  { %181 = shalt.err (!%p178_p7)
}
  0x10   :  { %s209_s28 = smov 128   ;;  %s210_s29 = smov 8  }
  0x11   :  { %23 = dma.hbm_to_vmem [thread:$0]  %s302_s0, 256, %s18_s19, [#allocation3], %s209_s28, %s209_s28, %s210_s29  }
  0x12   :  { %204 = dma.done.wait [#allocation3], 256  }
  0x13   :  { %205 = vsyncadd [#allocation3], 4294967040  ;;  %vm43_vm0 = vcmask 1043456   ;;  %v259_v0 = vld [vmem:[#allocation2] sm:$0xff]  ;;  %v261_v1 = vld [vmem:[#allocation2 + $0x8] sm:$0xff]  ;;  %vm57_vm1 = vcmask 125952   ;;  %v78_v21 = vlaneseq }
  0x14   :  { %v39_v2 = vcombine.high %v259_v0, %v259_v0  ;;  %v44_v3 = vsel %vm43_vm0, %v259_v0, 0.0  ;;  %v40_v4 = vcombine.high %v261_v1, %v261_v1  ;;  %v49_v6 = vsel %vm43_vm0, %v261_v1, 0.0  ;;  %v54_v10 = vld [vmem:[%s303_s1] sm:$0xf] }
  0x15   :  { %v79_v26 = vshrl.u32 %v78_v21, 7  ;;  %v72_v27 = vld [vmem:[%s304_s2] sm:$0x1]  ;;  %v211_v44 = vmov 0   ;;  %v212_v58 = vmov 839922192  }
  0x16   :  { %v45_v5 = vsel %vm43_vm0, %v39_v2, 0.0  ;;  %v50_v7 = vsel %vm43_vm0, %v40_v4, 0.0  ;;  %v77_v35 = vld [vmem:[%s305_s3] sm:$0xf]  ;;  %156 = vset.pattern.permute.xlu0 %v211_v44  ;;  %157 = vset.pattern.permute.xlu1 %v211_v44  ;;  %v114_v59 = vunpack.c.l.s4 %v212_v58  ;;  %s213_s3 = smov [#allocation5]  }
  0x17   :  { %v46_v8 = vadd.f32 %v45_v5, %v44_v3  ;;  %v51_v9 = vadd.f32 %v50_v7, %v49_v6  ;;  %v80_v32 = vsub.s32 0, %v79_v26  ;;  %v94_v45 = vld [vmem:[%s306_s4] sm:$0xf]  ;;  %s138_s4 = sshll.u32 %s213_s3, 4  ;;  %s139_s4 = int_to_ptr.vmem [resolvable:$true] %s138_s4 }
  0x18   :  { %v115_v60 = vunpack.c.0.s8 %v114_v59  ;;  %s182_s12 = scalar_lea.vmem %s139_s4, 256  ;;  %p187_p9 = scmp.lt.s32.totalorder %s139_s4, %s139_s4 }
  0x19   :  { %47 = vadd.xlane.f32.xlu0 %v46_v8  ;;  %p183_p8 = scmp.ne.s32.totalorder %s139_s4, %s182_s12  ;;  %p188_p10 = scmp.lt.s32.totalorder %s182_s12, %s182_s12 }
  0x1a   :  { %v118_v61 = vsub.s32 %v115_v60, %v79_v26 }
  0x1b   :  { %p189_p11 = por %p188_p10, %p187_p9 }
  0x1d   :  { %52 = vadd.xlane.f32.xlu0 %v51_v9  ;;  %p190_p12 = pnand %p189_p11, %p183_p8 }
  0xa6   :  { %v48_v11 = vpop.xlane.xlu0 %47 }
  0xa7   :  { %v55_v12 = vmul.f32 %v54_v10, %v48_v11 }
  0xa9   :  { %v58_v13 = vsel %vm57_vm1, %v55_v12, 0.0 }
  0xaa   :  { %v59_v14 = vrot.slane %v58_v13, 4  ;;  %v53_v15 = vpop.xlane.xlu0 %52 }
  0xab   :  { %v56_v16 = vmul.f32 %v54_v10, %v53_v15 }
  0xac   :  { %v60_v17 = vadd.f32 %v59_v14, %v58_v13 }
  0xad   :  { %v65_v18 = vsel %vm57_vm1, %v56_v16, 0.0 }
  0xae   :  { %v61_v19 = vrot.slane %v60_v17, 2  ;;  %v66_v20 = vrot.slane %v65_v18, 4 }
  0xb0   :  { %v62_v22 = vadd.f32 %v61_v19, %v60_v17  ;;  %v67_v23 = vadd.f32 %v66_v20, %v65_v18 }
  0xb2   :  { %v63_v24 = vrot.slane %v62_v22, 1  ;;  %v68_v25 = vrot.slane %v67_v23, 2 }
  0xb4   :  { %v64_v28 = vadd.f32 %v63_v24, %v62_v22  ;;  %v69_v29 = vadd.f32 %v68_v25, %v67_v23 }
  0xb6   :  { %v70_v30 = vrot.slane %v69_v29, 1  ;;  %v73_v31 = vadd.f32 %v72_v27, %v64_v28 }
  0xb8   :  { %v71_v33 = vadd.f32 %v70_v30, %v69_v29  ;;  %v75_v34 = vmax.f32 %v73_v31, 0.0 }
  0xba   :  { %v81_v36 = vrot.slane %v75_v34, %v80_v32  ;;  %v74_v37 = vadd.f32 %v72_v27, %v71_v33 }
  0xbc   :  { %v86_v38 = vmul.f32 %v81_v36, %v77_v35  ;;  %v76_v39 = vmax.f32 %v74_v37, 0.0 }
  0xbe   :  { %v88_v40 = vsel %vm57_vm1, %v86_v38, 0.0  ;;  %v85_v41 = vrot.slane %v76_v39, %v80_v32 }
  0xbf   :  { %89 = vadd.xlane.f32.xlu1 %v88_v40 }
  0xc0   :  { %v87_v42 = vmul.f32 %v85_v41, %v77_v35 }
  0xc2   :  { %v91_v43 = vsel %vm57_vm1, %v87_v42, 0.0 }
  0xc3   :  { %92 = vadd.xlane.f32.xlu1 %v91_v43 }
 0x14c   :  { %v90_v46 = vpop.xlane.xlu1 %89 }
 0x14d   :  { %v95_v47 = vadd.f32 %v94_v45, %v90_v46 }
 0x14f   :  { %v97_v48 = vmul.f32 0.16666667, %v95_v47 }
 0x150   :  { %v93_v49 = vpop.xlane.xlu1 %92 }
 0x151   :  { %v99_v50 = vadd.f32 0.5, %v97_v48  ;;  %v96_v51 = vadd.f32 %v94_v45, %v93_v49 }
 0x153   :  { %v101_v52 = vmax.f32 %v99_v50, 0.0  ;;  %v98_v53 = vmul.f32 0.16666667, %v96_v51 }
 0x155   :  { %v103_v54 = vmin.f32 %v101_v52, 1.0  ;;  %v100_v55 = vadd.f32 0.5, %v98_v53 }
 0x157   :  { %v102_v56 = vmax.f32 %v100_v55, 0.0  ;;  %107 = vperm.xlu0 %156, %v103_v54  }
 0x159   :  { %v104_v57 = vmin.f32 %v102_v56, 1.0 }
 0x15b   :  { %111 = vperm.xlu1 %157, %v104_v57  }
 0x1d6   :  { %v108_v62 = vpop.permute.xlu0 %107 }
 0x1d7   :  { %v119_v63 = vrot.slane %v108_v62, %v118_v61 }
 0x1d9   :  { %v129_v2 = vmul.f32 %v119_v63, %v259_v0 }
 0x1da   :  { %v112_v3 = vpop.permute.xlu1 %111 }
 0x1db   :  { %131 = vst [vmem:[#allocation5] sm:$0xff] %v129_v2  ;;  %v126_v4 = vrot.slane %v112_v3, %v118_v61 }
 0x1dd   :  { %v130_v5 = vmul.f32 %v126_v4, %v261_v1 }
 0x1df   :  { %132 = vst [vmem:[#allocation5 + $0x8] sm:$0xff] %v130_v5 }
 0x1e0   :  { %193 = shalt.err (!%p190_p12)
}
 0x1e1   :  { %s194_s15 = scalar_lea.hbm %s307_s5, 256 }
 0x1e2   :  { %p195_p13 = scmp.ne.s32.totalorder %s307_s5, %s194_s15  ;;  %p198_p0 = scmp.lt.u32.totalorder %s194_s15, %s307_s5 }
 0x1e4   :  { %p200_p1 = pnand %p198_p0, %p195_p13 }
 0x1e6   :  { %203 = shalt.err (!%p200_p1)
}
 0x1e7   :  { %144 = dma.vmem_to_hbm [thread:$0]  %s139_s4, 256, %s307_s5, [#allocation4], %s209_s28, %s209_s28, %s210_s29  }
 0x1e8   :  { %206 = dma.done.wait [#allocation4], 256  }
 0x1e9   :  { %207 = vsyncadd [#allocation4], 4294967040 }
 0x1ea   :  { %148 = vsyncpa [#allocation3], 1 }
 0x1eb   :  { %149 = vsyncpa [#allocation4], 1 }

</bundles_post_ra>
